<compile_context>
chip_gen: v5e
topology: v5e:2x2
jax: 0.10.0
libtpu: 0.0.40
codegen_flags: <defaults>
</compile_context>

<pallas_src>
import functools

import jax
import jax.numpy as jnp
from jax.experimental import pallas as pl
from jax.experimental.pallas import tpu as pltpu


def _round_up(x, m):
    return ((x + m - 1) // m) * m


def _patch_embed_kernel(p_ref, w_ref, add_ref, cls_ref, o_ref):
    """One grid step: project `bb` images and write the final token layout.

    p_ref:   (bb, n_patch, K)          bf16  flattened patches (streamed)
    w_ref:   (K, E_pad)                bf16  projection matrix (resident)
    add_ref: (1, E_pad)                f32   conv bias (+ broadcast positional row)
    cls_ref: (1, E_pad)                f32   class token (+ broadcast positional row)
    o_ref:   (bb, 1 + n_patch, E_pad)  final (batch, tokens, emb) layout
    """
    bb = p_ref.shape[0]
    w = w_ref[...]
    add = add_ref[...]
    cls_row = cls_ref[...].astype(o_ref.dtype)
    # Small static unroll over the per-step batch block (bb <= 8); each image is
    # one MXU matmul with full-K depth plus a fused f32 epilogue + offset store.
    for b in range(bb):
        acc = jnp.dot(p_ref[b], w, preferred_element_type=jnp.float32)
        o_ref[b, 0:1, :] = cls_row                          # class-token row
        o_ref[b, 1:, :] = (acc + add).astype(o_ref.dtype)   # patch rows (+1 offset)


def _pick_batch_block(B, n_patch, T, K, E_pad):
    """Images per grid step: as large as fits the default scoped-VMEM limits."""
    per_image = n_patch * K * 2 + T * E_pad * 4          # bf16 in + f32 out, per image
    resident = 2 * K * E_pad * 2 + 2 * 2 * E_pad * 4      # W (default double buffer) + 2 rows
    budget = 12 * 1024 * 1024                              # safe under v5e's 16 MiB default
    bb = (budget - resident) // (2 * per_image)            # x2: double-buffered streams
    return int(max(1, min(B, bb, 8)))                      # cap the in-kernel unroll length


def _patch_projection(patches, w_mat, add_vec, cls_vec, *, batch_block,
                      out_dtype=jnp.float32):
    """patches (B, n_patch, K) bf16 -> (B, 1+n_patch, E_pad) final token layout."""
    B, n_patch, K = patches.shape
    E_pad = w_mat.shape[1]
    T = n_patch + 1
    bb = batch_block
    grid = (pl.cdiv(B, bb),)

    flops = 2 * B * n_patch * K * E_pad
    bytes_accessed = (B * n_patch * K * 2          # patches (bf16)
                      + K * E_pad * 2              # weight (bf16)
                      + 4 * E_pad * 4              # bias/pos + class rows (f32)
                      + B * T * E_pad * jnp.dtype(out_dtype).itemsize)

    return pl.pallas_call(
        _patch_embed_kernel,
        out_shape=jax.ShapeDtypeStruct((B, T, E_pad), out_dtype),
        grid_spec=pltpu.PrefetchScalarGridSpec(
            num_scalar_prefetch=0,
            grid=grid,
            in_specs=[
                pl.BlockSpec((bb, n_patch, K), lambda i: (i, 0, 0)),  # streamed
                pl.BlockSpec((K, E_pad), lambda i: (0, 0)),           # resident W
                pl.BlockSpec((1, E_pad), lambda i: (0, 0)),           # bias+pos row
                pl.BlockSpec((1, E_pad), lambda i: (0, 0)),           # cls+pos row
            ],
            out_specs=pl.BlockSpec((bb, T, E_pad), lambda i: (i, 0, 0)),
        ),
        compiler_params=pltpu.CompilerParams(
            # Batch blocks are independent: shard across TensorCores (v7x megacore).
            dimension_semantics=("parallel",)),
        cost_estimate=pl.CostEstimate(
            flops=flops, transcendentals=0, bytes_accessed=bytes_accessed),
    )(patches, w_mat, add_vec, cls_vec)


@functools.partial(jax.jit, static_argnames=("patch_size",))
def patch_embedding_forward(x, conv_w, conv_b, class_token, positions, patch_size):
    """Reproduces PatchEmbedding.forward.

    x:           (B, C, H, W)                NCHW, float32
    conv_w:      (E, C, P, P)                Conv2d weight
    conv_b:      (E,)                        Conv2d bias
    class_token: (1, 1, E)
    positions:   (img_size // P**2 + 1, E)   (== (1, E) for the module's formula)
    returns:     (B, 1 + (H//P)*(W//P), E)   float32
    """
    B, C, H, W = x.shape
    E = conv_w.shape[0]
    P = patch_size
    Hp, Wp = H // P, W // P
    n_patch = Hp * Wp
    T = n_patch + 1
    K = C * P * P

    # --- glue (single jit-fused transpose-copy): extract patches, (c,u,v) order ---
    # TODO(synk): fold this NCHW relayout into the kernel once Mosaic reliably
    # lowers the lane-refolding rank-5 transpose; it would save one HBM pass.
    patches = x.reshape(B, C, Hp, P, Wp, P).transpose(0, 2, 4, 1, 3, 5)
    patches = patches.reshape(B, n_patch, K).astype(jnp.bfloat16)   # bf16 -> MXU
    w_mat = conv_w.reshape(E, K).T.astype(jnp.bfloat16)             # (K, E), k=(c,u,v)

    bias = conv_b.astype(jnp.float32)[None, :]                      # (1, E)
    cls_row = class_token.reshape(1, E).astype(jnp.float32)         # (1, E)
    pos = positions.astype(jnp.float32)

    # The module's positions formula always yields one row, which PyTorch
    # broadcasts over every token: fold it into both epilogue rows.
    fold_pos = pos.shape[0] == 1
    add_vec = bias + pos if fold_pos else bias                      # patch rows
    cls_vec = cls_row + pos if fold_pos else cls_row                # class-token row

    # Lane-dense output stores: pad E up to a multiple of 128 (unmasked vst),
    # slice back afterwards.  No-op for real ViT widths (e.g. E=768).
    E_pad = _round_up(E, 128)
    if E_pad != E:
        w_mat = jnp.pad(w_mat, ((0, 0), (0, E_pad - E)))
        add_vec = jnp.pad(add_vec, ((0, 0), (0, E_pad - E)))
        cls_vec = jnp.pad(cls_vec, ((0, 0), (0, E_pad - E)))

    # --- hot path: conv-as-matmul + fused bias/pos/class-token epilogue, and the
    #     final (B, 1+n_patch, E_pad) token layout written directly (no concat) ---
    bb = _pick_batch_block(B, n_patch, T, K, E_pad)
    out = _patch_projection(patches, w_mat, add_vec, cls_vec, batch_block=bb,
                            out_dtype=jnp.float32)                  # module emits f32

    if E_pad != E:
        out = out[..., :E]
    if not fold_pos:
        # General (non-broadcast) positional table: mirror the module's `x += positions`.
        out = out + pos
    return out


if __name__ == "__main__":
    # Small shapes consistent with the module:
    #   batch=2, in_channels=4, img_size=16, patch_size=8, emb_size=32
    #   -> 4 patches, 5 tokens, positions rows = 16 // 8**2 + 1 = 1 (broadcasts)
    B, C, IMG, P, E = 2, 4, 16, 8, 32

    key = jax.random.PRNGKey(0)
    kx, kw, kb, kc, kp = jax.random.split(key, 5)

    x = jax.random.uniform(kx, (B, C, IMG, IMG), dtype=jnp.float32)
    conv_w = jax.random.normal(kw, (E, C, P, P), dtype=jnp.float32) * 0.02
    conv_b = jax.random.normal(kb, (E,), dtype=jnp.float32) * 0.02
    class_token = jax.random.uniform(kc, (1, 1, E), dtype=jnp.float32)
    positions = jax.random.uniform(kp, (IMG // P**2 + 1, E), dtype=jnp.float32)

    out = patch_embedding_forward(x, conv_w, conv_b, class_token, positions, P)
    out = jax.block_until_ready(out)
    assert out.shape == (B, 1 + (IMG // P) ** 2, E)
    assert out.dtype == jnp.float32

    # Reference 1 (tight): same bf16 inputs, f32 accumulation via XLA conv.
    ref_bf = jax.lax.conv_general_dilated(
        x.astype(jnp.bfloat16), conv_w.astype(jnp.bfloat16),
        window_strides=(P, P), padding="VALID",
        dimension_numbers=("NCHW", "OIHW", "NCHW"),
        preferred_element_type=jnp.float32) + conv_b[None, :, None, None]
    ref_bf = ref_bf.reshape(B, E, -1).transpose(0, 2, 1)
    ref_bf = jnp.concatenate(
        [jnp.broadcast_to(class_token, (B, 1, E)), ref_bf], axis=1) + positions
    assert jnp.allclose(out, ref_bf, atol=1e-3, rtol=1e-3)

    # Reference 2 (loose): full-f32 conv; difference is only bf16 input rounding.
    ref_f32 = jax.lax.conv_general_dilated(
        x, conv_w, window_strides=(P, P), padding="VALID",
        dimension_numbers=("NCHW", "OIHW", "NCHW")) + conv_b[None, :, None, None]
    ref_f32 = ref_f32.reshape(B, E, -1).transpose(0, 2, 1)
    ref_f32 = jnp.concatenate(
        [jnp.broadcast_to(class_token, (B, 1, E)), ref_f32], axis=1) + positions
    assert jnp.allclose(out, ref_f32, atol=3e-2, rtol=3e-2)

    print("KERNEL_OK")
</pallas_src>

<mosaic_0001>
module attributes {stable_mosaic.version = 11 : i64} {
  func.func @_patch_embed_kernel(%arg0: i32, %arg1: memref<2x4x256xbf16, #tpu.memory_space<vmem>>, %arg2: memref<256x128xbf16, #tpu.memory_space<vmem>>, %arg3: memref<1x128xf32, #tpu.memory_space<vmem>>, %arg4: memref<1x128xf32, #tpu.memory_space<vmem>>, %arg5: memref<2x5x128xf32, #tpu.memory_space<vmem>>) attributes {dimension_semantics = [#tpu.dimension_semantics<parallel>], iteration_bounds = array<i64: 1>, scalar_prefetch = 0 : i64, scratch_operands = 0 : i64, tpu.core_type = #tpu.core_type<tc>, window_params = [{transform_indices = @transform_0, window_bounds = array<i64: 2, 4, 256>}, {pipeline_mode = #tpu.pipeline_mode<synchronous>, transform_indices = @transform_1, window_bounds = array<i64: 256, 128>}, {pipeline_mode = #tpu.pipeline_mode<synchronous>, transform_indices = @transform_2, window_bounds = array<i64: 1, 128>}, {pipeline_mode = #tpu.pipeline_mode<synchronous>, transform_indices = @transform_3, window_bounds = array<i64: 1, 128>}, {transform_indices = @transform_4, window_bounds = array<i64: 2, 5, 128>}]} {
    %c0 = arith.constant 0 : index
    %c0_0 = arith.constant 0 : index
    %0 = vector.load %arg2[%c0, %c0_0] : memref<256x128xbf16, #tpu.memory_space<vmem>>, vector<256x128xbf16>
    %c0_1 = arith.constant 0 : index
    %c0_2 = arith.constant 0 : index
    %1 = vector.load %arg3[%c0_1, %c0_2] : memref<1x128xf32, #tpu.memory_space<vmem>>, vector<1x128xf32>
    %c0_3 = arith.constant 0 : index
    %c0_4 = arith.constant 0 : index
    %2 = vector.load %arg4[%c0_3, %c0_4] : memref<1x128xf32, #tpu.memory_space<vmem>>, vector<1x128xf32>
    %c0_5 = arith.constant 0 : index
    %c0_6 = arith.constant 0 : index
    %c0_7 = arith.constant 0 : index
    %3 = vector.load %arg1[%c0_5, %c0_6, %c0_7] : memref<2x4x256xbf16, #tpu.memory_space<vmem>>, vector<1x4x256xbf16>
    %4 = vector.shape_cast %3 : vector<1x4x256xbf16> to vector<4x256xbf16>
    %cst = arith.constant dense<0.000000e+00> : vector<4x128xf32>
    %5 = tpu.matmul %4, %0, %cst {dimension_numbers = #tpu.dot_dimension_numbers<[1], [0], [0], [1], [0, 0, 1, 1], [], []>} : vector<4x256xbf16>, vector<256x128xbf16>, vector<4x128xf32> -> vector<4x128xf32>
    %c0_8 = arith.constant 0 : index
    %c0_9 = arith.constant 0 : index
    %c0_10 = arith.constant 0 : index
    %6 = vector.load %arg5[%c0_8, %c0_9, %c0_10] : memref<2x5x128xf32, #tpu.memory_space<vmem>>, vector<1x1x128xf32>
    %7 = vector.shape_cast %6 : vector<1x1x128xf32> to vector<1x128xf32>
    %8 = vector.shape_cast %2 : vector<1x128xf32> to vector<1x1x128xf32>
    tpu.vector_store %arg5[%c0_8, %c0_9, %c0_10], %8 {strides = array<i32>} : memref<2x5x128xf32, #tpu.memory_space<vmem>>, vector<1x1x128xf32>,
    %9 = vector.broadcast %1 : vector<1x128xf32> to vector<4x128xf32>
    %10 = arith.addf %5, %9 : vector<4x128xf32>
    %c0_11 = arith.constant 0 : index
    %c1 = arith.constant 1 : index
    %c0_12 = arith.constant 0 : index
    %11 = vector.load %arg5[%c0_11, %c1, %c0_12] : memref<2x5x128xf32, #tpu.memory_space<vmem>>, vector<1x4x128xf32>
    %12 = vector.shape_cast %11 : vector<1x4x128xf32> to vector<4x128xf32>
    %13 = vector.shape_cast %10 : vector<4x128xf32> to vector<1x4x128xf32>
    tpu.vector_store %arg5[%c0_11, %c1, %c0_12], %13 {strides = array<i32>} : memref<2x5x128xf32, #tpu.memory_space<vmem>>, vector<1x4x128xf32>,
    %c1_13 = arith.constant 1 : index
    %c0_14 = arith.constant 0 : index
    %c0_15 = arith.constant 0 : index
    %14 = vector.load %arg1[%c1_13, %c0_14, %c0_15] : memref<2x4x256xbf16, #tpu.memory_space<vmem>>, vector<1x4x256xbf16>
    %15 = vector.shape_cast %14 : vector<1x4x256xbf16> to vector<4x256xbf16>
    %cst_16 = arith.constant dense<0.000000e+00> : vector<4x128xf32>
    %16 = tpu.matmul %15, %0, %cst_16 {dimension_numbers = #tpu.dot_dimension_numbers<[1], [0], [0], [1], [0, 0, 1, 1], [], []>} : vector<4x256xbf16>, vector<256x128xbf16>, vector<4x128xf32> -> vector<4x128xf32>
    %c1_17 = arith.constant 1 : index
    %c0_18 = arith.constant 0 : index
    %c0_19 = arith.constant 0 : index
    %17 = vector.load %arg5[%c1_17, %c0_18, %c0_19] : memref<2x5x128xf32, #tpu.memory_space<vmem>>, vector<1x1x128xf32>
    %18 = vector.shape_cast %17 : vector<1x1x128xf32> to vector<1x128xf32>
    %19 = vector.shape_cast %2 : vector<1x128xf32> to vector<1x1x128xf32>
    tpu.vector_store %arg5[%c1_17, %c0_18, %c0_19], %19 {strides = array<i32>} : memref<2x5x128xf32, #tpu.memory_space<vmem>>, vector<1x1x128xf32>,
    %20 = vector.broadcast %1 : vector<1x128xf32> to vector<4x128xf32>
    %21 = arith.addf %16, %20 : vector<4x128xf32>
    %c1_20 = arith.constant 1 : index
    %c1_21 = arith.constant 1 : index
    %c0_22 = arith.constant 0 : index
    %22 = vector.load %arg5[%c1_20, %c1_21, %c0_22] : memref<2x5x128xf32, #tpu.memory_space<vmem>>, vector<1x4x128xf32>
    %23 = vector.shape_cast %22 : vector<1x4x128xf32> to vector<4x128xf32>
    %24 = vector.shape_cast %21 : vector<4x128xf32> to vector<1x4x128xf32>
    tpu.vector_store %arg5[%c1_20, %c1_21, %c0_22], %24 {strides = array<i32>} : memref<2x5x128xf32, #tpu.memory_space<vmem>>, vector<1x4x128xf32>,
    return
  }
  func.func @transform_0(%arg0: i32) -> (i32, i32, i32) {
    %c0_i32 = arith.constant 0 : i32
    %c0_i32_0 = arith.constant 0 : i32
    %c0_i32_1 = arith.constant 0 : i32
    return %arg0, %c0_i32, %c0_i32_0 : i32, i32, i32
  }
  func.func @transform_1(%arg0: i32) -> (i32, i32) {
    %c0_i32 = arith.constant 0 : i32
    %c0_i32_0 = arith.constant 0 : i32
    %c0_i32_1 = arith.constant 0 : i32
    return %c0_i32, %c0_i32_0 : i32, i32
  }
  func.func @transform_2(%arg0: i32) -> (i32, i32) {
    %c0_i32 = arith.constant 0 : i32
    %c0_i32_0 = arith.constant 0 : i32
    %c0_i32_1 = arith.constant 0 : i32
    return %c0_i32, %c0_i32_0 : i32, i32
  }
  func.func @transform_3(%arg0: i32) -> (i32, i32) {
    %c0_i32 = arith.constant 0 : i32
    %c0_i32_0 = arith.constant 0 : i32
    %c0_i32_1 = arith.constant 0 : i32
    return %c0_i32, %c0_i32_0 : i32, i32
  }
  func.func @transform_4(%arg0: i32) -> (i32, i32, i32) {
    %c0_i32 = arith.constant 0 : i32
    %c0_i32_0 = arith.constant 0 : i32
    %c0_i32_1 = arith.constant 0 : i32
    return %arg0, %c0_i32, %c0_i32_0 : i32, i32, i32
  }
}

</mosaic_0001>

<bundles_post_ra>
// kernel: patch_embedding_forward.1
= control target key start
LH: loop header
LB: loop body
LE: loop exit
PB: predicated region body
PF: predicated region fallthrough
CT: control target
= control target key end

     0   :  { %s407_s1 = inlined_call_operand.vmem [shape: bf16[256,128], index: 1, kind: input, shape index: {}]   ;;  %s408_s0 = inlined_call_operand.vmem [shape: bf16[2,4,256], index: 0, kind: input, shape index: {}]   ;;  %s409_s2 = inlined_call_operand.vmem [shape: f32[1,128], index: 2, kind: input, shape index: {}]   ;;  %s410_s3 = inlined_call_operand.vmem [shape: f32[1,128], index: 3, kind: input, shape index: {}]   ;;  %s411_s4 = inlined_call_operand.vmem [shape: f32[2,5,128], index: 4, kind: output, shape index: {}]  }
   0x1   :  { %v300_v0 = vld [vmem:[%s407_s1 + $0x38] sm:$0xff]  ;;  %v299_v2 = vld [vmem:[%s407_s1 + $0x30] sm:$0xff]  ;;  %v51_v4 = vld [vmem:[%s408_s0] sm:$0xf] }
   0x2   :  { %v308_v1 = vld [vmem:[%s407_s1 + $0x78] sm:$0xff]  ;;  %158 = vmatpush.bf16.msra.mxu0 %v300_v0  ;;  %v307_v3 = vld [vmem:[%s407_s1 + $0x70] sm:$0xff]  ;;  %195 = vmatpush.bf16.msra.mxu2 %v300_v0  ;;  %v298_v5 = vld [vmem:[%s407_s1 + $0x28] sm:$0xff]  ;;  %57 = vst [vmem:[#allocation1] ss:$4 sm:$0xff] %v51_v4 }
   0x3   :  { %171 = vmatpush.bf16.msra.mxu1 %v308_v1  ;;  %208 = vmatpush.bf16.msra.mxu3 %v308_v1  ;;  %v306_v6 = vld [vmem:[%s407_s1 + $0x68] sm:$0xff]  ;;  %v297_v7 = vld [vmem:[%s407_s1 + $0x20] sm:$0xff]  ;;  %v296_v12 = vld [vmem:[%s407_s1 + $0x18] sm:$0xff] }
   0x4   :  { %v305_v8 = vld [vmem:[%s407_s1 + $0x60] sm:$0xff]  ;;  %v304_v13 = vld [vmem:[%s407_s1 + $0x58] sm:$0xff]  ;;  %v295_v14 = vld [vmem:[%s407_s1 + $0x10] sm:$0xff] }
   0x5   :  { %v290_v9 = vld [vmem:[%s408_s0 + $0x4] sm:$0xf]  ;;  %v303_v15 = vld [vmem:[%s407_s1 + $0x50] sm:$0xff]  ;;  %v294_v16 = vld [vmem:[%s407_s1 + $0x8] sm:$0xff] }
   0x6   :  { %159 = vmatpush.bf16.msra.mxu0 %v299_v2  ;;  %196 = vmatpush.bf16.msra.mxu2 %v299_v2  ;;  %v302_v17 = vld [vmem:[%s407_s1 + $0x48] sm:$0xff]  ;;  %v293_v18 = vld [vmem:[%s407_s1] sm:$0xff] }
   0x7   :  { %172 = vmatpush.bf16.msra.mxu1 %v307_v3  ;;  %209 = vmatpush.bf16.msra.mxu3 %v307_v3  ;;  %v301_v19 = vld [vmem:[%s407_s1 + $0x40] sm:$0xff] }
   0x8   :  { %v50_v22 = vld [vmem:[%s410_s3] sm:$0x1] }
   0x9   :  { %v58_v10 = vld.sshfl [vmem:[#allocation1] sm:$0xff pattern:$0x73625140]  ;;  %v59_v11 = vld.sshfl [vmem:[#allocation1 + $0x8] sm:$0xff pattern:$0x73625140] }
   0xa   :  { %160 = vmatpush.bf16.msra.mxu0 %v298_v5  ;;  %197 = vmatpush.bf16.msra.mxu2 %v298_v5  ;;  %190 = vst [vmem:[#allocation1] ss:$4 sm:$0xff] %v290_v9  ;;  %v309_v23 = vld [vmem:[%s409_s2] ss:$0 sm:$0xff] }
   0xb   :  { %173 = vmatpush.bf16.msra.mxu1 %v306_v6  ;;  %210 = vmatpush.bf16.msra.mxu3 %v306_v6  ;;  %52 = vst [vmem:[%s411_s4] sm:$0x1] %v50_v22 }
   0xc   :  { %291 = vst [vmem:[%s411_s4 + $0x8] sm:$0x1] %v50_v22 }
   0xe   :  { %161 = vmatpush.bf16.msra.mxu0 %v297_v7  ;;  %198 = vmatpush.bf16.msra.mxu2 %v297_v7 }
   0xf   :  { %174 = vmatpush.bf16.msra.mxu1 %v305_v8  ;;  %211 = vmatpush.bf16.msra.mxu3 %v305_v8 }
  0x11   :  { %v191_v20 = vld.sshfl [vmem:[#allocation1] sm:$0xff pattern:$0x73625140]  ;;  %v192_v21 = vld.sshfl [vmem:[#allocation1 + $0x8] sm:$0xff pattern:$0x73625140] }
  0x12   :  { %162 = vmatpush.bf16.msra.mxu0 %v296_v12  ;;  %199 = vmatpush.bf16.msra.mxu2 %v296_v12 }
  0x13   :  { %175 = vmatpush.bf16.msra.mxu1 %v304_v13  ;;  %212 = vmatpush.bf16.msra.mxu3 %v304_v13 }
  0x16   :  { %163 = vmatpush.bf16.msra.mxu0 %v295_v14  ;;  %200 = vmatpush.bf16.msra.mxu2 %v295_v14 }
  0x17   :  { %176 = vmatpush.bf16.msra.mxu1 %v303_v15  ;;  %213 = vmatpush.bf16.msra.mxu3 %v303_v15 }
  0x1a   :  { %164 = vmatpush.bf16.msra.mxu0 %v294_v16  ;;  %201 = vmatpush.bf16.msra.mxu2 %v294_v16 }
  0x1b   :  { %177 = vmatpush.bf16.msra.mxu1 %v302_v17  ;;  %214 = vmatpush.bf16.msra.mxu3 %v302_v17 }
  0x1e   :  { %165 = vmatpush.bf16.msra.mxu0 %v293_v18  ;;  %202 = vmatpush.bf16.msra.mxu2 %v293_v18 }
  0x1f   :  { %178 = vmatpush.bf16.msra.mxu1 %v301_v19  ;;  %215 = vmatpush.bf16.msra.mxu3 %v301_v19 }
  0x21   :  { %166 = vmatmul.bf16.vlgmr.msra.gmra.mxu0 %v58_v10  ;;  %203 = vmatmul.bf16.vlgmr.msra.gmra.mxu2 %v191_v20 }
  0x22   :  { %179 = vmatmul.bf16.vlgmr.msra.gmra.mxu1 %v59_v11  ;;  %216 = vmatmul.bf16.vlgmr.msra.gmra.mxu3 %v192_v21 }
  0x9e   :  { %v167_v24 = vpop.f32.mrf.mxu0 }
  0x9f   :  { %v180_v25 = vpop.f32.mrf.mxu1  ;;  %v168_v26 = vadd.f32 %v309_v23, %v167_v24 }
  0xa1   :  { %v181_v27 = vadd.f32 %v180_v25, %v168_v26 }
  0xa3   :  { %184 = vst [vmem:[%s411_s4 + $0x1] sm:$0xf] %v181_v27 }
  0xa4   :  { %v204_v28 = vpop.f32.mrf.mxu2 }
  0xa5   :  { %v217_v29 = vpop.f32.mrf.mxu3  ;;  %v205_v30 = vadd.f32 %v309_v23, %v204_v28 }
  0xa6   :  { %v169_v31 = vpop.f32.mrf.mxu0 }
  0xa7   :  { %v182_v32 = vpop.f32.mrf.mxu1  ;;  %v218_v33 = vadd.f32 %v217_v29, %v205_v30 }
  0xa9   :  { %292 = vst [vmem:[%s411_s4 + $0x9] sm:$0xf] %v218_v33 }
  0xac   :  { %v206_v34 = vpop.f32.mrf.mxu2 }
  0xad   :  { %v219_v35 = vpop.f32.mrf.mxu3 }

</bundles_post_ra>
